<compile_context>
chip_gen: v7x
topology: tpu7x:2x2x1
jax: 0.10.0
libtpu: 0.0.40
codegen_flags: <defaults>
</compile_context>

<pallas_src>
import jax
import jax.numpy as jnp
from jax.experimental import pallas as pl
from jax.experimental.pallas import tpu as pltpu

SUBLANE = 8     # f32 sublane tile
TN = 128        # lane tile for the concatenated branch-output axis


def fused_embed_dense_kernel(g_ref, we_ref, be_ref, wall_ref, ball_ref, o_ref):
    # g_ref:    (B_pad, inter_dim)      replicated across the grid
    # we_ref:   (inter_dim, embed_dim)  replicated
    # be_ref:   (1, embed_dim)          replicated
    # wall_ref: (embed_dim, TN)         j-th tile of concatenated branch weights
    # ball_ref: (1, TN)                 j-th tile of concatenated branch biases
    # o_ref:    (B_pad, TN)
    emb = jnp.dot(g_ref[...], we_ref[...], preferred_element_type=jnp.float32)
    emb = emb + be_ref[...]
    # SiLU in f32 (EUP exp + VPU mul). Recomputed per N-tile: an 8x32x256 matmul
    # is negligible and far cheaper than a second kernel launch; it also keeps
    # the single grid axis "parallel" (megacore-friendly, no cross-tile state).
    emb = emb * (1.0 / (1.0 + jnp.exp(-emb)))
    acc = jnp.dot(emb.astype(wall_ref.dtype), wall_ref[...],
                  preferred_element_type=jnp.float32)
    o_ref[...] = (acc + ball_ref[...]).astype(o_ref.dtype)


def prepare_fused_params(embed_w, embed_b, branch_ws, branch_bs, lane=TN):
    """One-time parameter packing (done at init, NOT per forward call).

    embed_w:   [embed_dim, inter_dim]  (PyTorch nn.Linear layout) -> transposed once
    branch_ws: list of [C_i, embed_dim]                           -> concat + transpose once
    """
    embed_dim, inter_dim = embed_w.shape
    we_t = jnp.asarray(embed_w).T                       # [inter_dim, embed_dim]
    be_2d = jnp.asarray(embed_b).reshape(1, embed_dim)

    w_all = jnp.concatenate([jnp.asarray(w).T for w in branch_ws], axis=1)  # [embed_dim, N]
    b_all = jnp.concatenate([jnp.asarray(b) for b in branch_bs], axis=0)    # [N]
    n_total = w_all.shape[1]
    n_pad = ((n_total + lane - 1) // lane) * lane
    if n_pad != n_total:                                 # zero-pad to lane-dense width
        w_all = jnp.pad(w_all, ((0, 0), (0, n_pad - n_total)))
        b_all = jnp.pad(b_all, ((0, n_pad - n_total),))
    b_all = b_all.reshape(1, n_pad)
    return dict(we_t=we_t, be=be_2d, w_all=w_all, b_all=b_all,
                n_total=n_total, n_pad=n_pad,
                inter_dim=inter_dim, embed_dim=embed_dim)


def multi_branch_dense_forward(g, params, branch_dims):
    """g: [B, inter_dim] = gamma_embedding(t) features.

    Returns a list of [B, C_i, 1, 1] arrays, one per Dense branch head, matching
    `Dense_i(SiLU(embed_linear(g)))[..., None, None]` in the PyTorch module.
    """
    B, inter_dim = g.shape
    assert inter_dim == params["inter_dim"]
    embed_dim = params["embed_dim"]
    n_pad = params["n_pad"]
    n_total = params["n_total"]

    b_pad = ((B + SUBLANE - 1) // SUBLANE) * SUBLANE
    g_pad = jnp.pad(g, ((0, b_pad - B), (0, 0)))         # full (8, *) sublane tile

    num_tiles = n_pad // TN
    flops = (2 * b_pad * inter_dim * embed_dim * num_tiles
             + 2 * b_pad * embed_dim * n_pad)
    bytes_accessed = 4 * (g_pad.size + params["we_t"].size + params["be"].size
                          + params["w_all"].size + params["b_all"].size
                          + b_pad * n_pad)

    y = pl.pallas_call(
        fused_embed_dense_kernel,
        out_shape=jax.ShapeDtypeStruct((b_pad, n_pad), g.dtype),
        grid_spec=pltpu.PrefetchScalarGridSpec(
            num_scalar_prefetch=0,
            grid=(num_tiles,),
            in_specs=[
                pl.BlockSpec((b_pad, inter_dim), lambda j: (0, 0)),
                pl.BlockSpec((inter_dim, embed_dim), lambda j: (0, 0)),
                pl.BlockSpec((1, embed_dim), lambda j: (0, 0)),
                pl.BlockSpec((embed_dim, TN), lambda j: (0, j)),
                pl.BlockSpec((1, TN), lambda j: (0, j)),
            ],
            out_specs=pl.BlockSpec((b_pad, TN), lambda j: (0, j)),
        ),
        compiler_params=pltpu.CompilerParams(
            dimension_semantics=("parallel",),
            vmem_limit_bytes=32 * 1024 * 1024,
        ),
        cost_estimate=pl.CostEstimate(
            flops=flops,
            transcendentals=b_pad * embed_dim * num_tiles,
            bytes_accessed=bytes_accessed,
        ),
    )(g_pad, params["we_t"], params["be"], params["w_all"], params["b_all"])

    # Strip padding and split back into the per-branch [B, C_i, 1, 1] maps
    # (the `[..., None, None]` glue from the PyTorch `Dense` module).
    y = y[:B, :n_total]
    outs = []
    off = 0
    for c in branch_dims:
        outs.append(y[:, off:off + c][..., None, None])
        off += c
    return outs


if __name__ == "__main__":
    # Shapes from Multi_branch_Unet defaults: inter_dim=32, embed_dim=256,
    # channels=[32, 64, 128, 256]; batch=2.
    B = 2
    INTER_DIM = 32
    EMBED_DIM = 256
    CHANNELS = [32, 64, 128, 256]
    BRANCH_DIMS = [
        CHANNELS[0],  # res1.dense1
        CHANNELS[0],  # res3.dense1
        CHANNELS[1],  # down1.dense1
        CHANNELS[2],  # down2.dense1
        CHANNELS[3],  # middle2.dense1
        CHANNELS[3],  # middle1.dense1
        CHANNELS[3],  # up1.dense1
        CHANNELS[2],  # dense2
        CHANNELS[1],  # dense3
        CHANNELS[0],  # dense4
        CHANNELS[0],  # dense5
        CHANNELS[0],  # dense6
    ]

    key = jax.random.PRNGKey(0)
    kg, ke_w, ke_b, kb = jax.random.split(key, 4)

    # gamma_embedding(t) features (gamma_embedding itself is undefined in the spec).
    g = jax.random.normal(kg, (B, INTER_DIM), dtype=jnp.float32)

    # Deterministic synthetic parameters (PyTorch nn.Linear layouts).
    bound_e = 1.0 / jnp.sqrt(INTER_DIM)
    embed_w = jax.random.uniform(ke_w, (EMBED_DIM, INTER_DIM),
                                 minval=-bound_e, maxval=bound_e, dtype=jnp.float32)
    embed_b = jax.random.uniform(ke_b, (EMBED_DIM,),
                                 minval=-bound_e, maxval=bound_e, dtype=jnp.float32)

    bound_d = 1.0 / jnp.sqrt(EMBED_DIM)
    branch_keys = jax.random.split(kb, 2 * len(BRANCH_DIMS))
    branch_ws = [jax.random.uniform(branch_keys[2 * i], (c, EMBED_DIM),
                                    minval=-bound_d, maxval=bound_d, dtype=jnp.float32)
                 for i, c in enumerate(BRANCH_DIMS)]
    branch_bs = [jax.random.uniform(branch_keys[2 * i + 1], (c,),
                                    minval=-bound_d, maxval=bound_d, dtype=jnp.float32)
                 for i, c in enumerate(BRANCH_DIMS)]

    # One-time packing: concat + transpose + pad (no per-call weight.T).
    params = prepare_fused_params(embed_w, embed_b, branch_ws, branch_bs, lane=TN)

    outs = multi_branch_dense_forward(g, params, BRANCH_DIMS)
    outs = jax.block_until_ready(outs)

    # Reference (plain JAX), matching the PyTorch semantics.
    emb_ref = g @ embed_w.T + embed_b
    emb_ref = emb_ref * jax.nn.sigmoid(emb_ref)            # SiLU
    ok = True
    for i, (w, b, c) in enumerate(zip(branch_ws, branch_bs, BRANCH_DIMS)):
        ref = (emb_ref @ w.T + b)[..., None, None]         # [B, C_i, 1, 1]
        assert outs[i].shape == (B, c, 1, 1), (i, outs[i].shape)
        ok &= bool(jnp.allclose(outs[i], ref, atol=2e-3, rtol=2e-3))
    assert ok, "mismatch vs reference"

    print("KERNEL_OK")
</pallas_src>

<mosaic_0001>
module attributes {stable_mosaic.version = 11 : i64} {
  func.func @fused_embed_dense_kernel(%arg0: i32, %arg1: memref<8x32xf32, #tpu.memory_space<vmem>>, %arg2: memref<32x256xf32, #tpu.memory_space<vmem>>, %arg3: memref<1x256xf32, #tpu.memory_space<vmem>>, %arg4: memref<256x128xf32, #tpu.memory_space<vmem>>, %arg5: memref<1x128xf32, #tpu.memory_space<vmem>>, %arg6: memref<8x128xf32, #tpu.memory_space<vmem>>) attributes {dimension_semantics = [#tpu.dimension_semantics<parallel>], iteration_bounds = array<i64: 11>, scalar_prefetch = 0 : i64, scratch_operands = 0 : i64, tpu.core_type = #tpu.core_type<tc>, window_params = [{pipeline_mode = #tpu.pipeline_mode<synchronous>, transform_indices = @transform_0, window_bounds = array<i64: 8, 32>}, {pipeline_mode = #tpu.pipeline_mode<synchronous>, transform_indices = @transform_1, window_bounds = array<i64: 32, 256>}, {pipeline_mode = #tpu.pipeline_mode<synchronous>, transform_indices = @transform_2, window_bounds = array<i64: 1, 256>}, {transform_indices = @transform_3, window_bounds = array<i64: 256, 128>}, {transform_indices = @transform_4, window_bounds = array<i64: 1, 128>}, {transform_indices = @transform_5, window_bounds = array<i64: 8, 128>}]} {
    %c0 = arith.constant 0 : index
    %c0_0 = arith.constant 0 : index
    %0 = vector.load %arg1[%c0, %c0_0] : memref<8x32xf32, #tpu.memory_space<vmem>>, vector<8x32xf32>
    %c0_1 = arith.constant 0 : index
    %c0_2 = arith.constant 0 : index
    %1 = vector.load %arg2[%c0_1, %c0_2] : memref<32x256xf32, #tpu.memory_space<vmem>>, vector<32x256xf32>
    %cst = arith.constant dense<0.000000e+00> : vector<8x256xf32>
    %2 = tpu.matmul %0, %1, %cst {dimension_numbers = #tpu.dot_dimension_numbers<[1], [0], [0], [1], [0, 0, 1, 1], [], []>} : vector<8x32xf32>, vector<32x256xf32>, vector<8x256xf32> -> vector<8x256xf32>
    %c0_3 = arith.constant 0 : index
    %c0_4 = arith.constant 0 : index
    %3 = vector.load %arg3[%c0_3, %c0_4] : memref<1x256xf32, #tpu.memory_space<vmem>>, vector<1x256xf32>
    %4 = vector.broadcast %3 : vector<1x256xf32> to vector<8x256xf32>
    %5 = arith.addf %2, %4 : vector<8x256xf32>
    %cst_5 = arith.constant 0.000000e+00 : f32
    %6 = vector.broadcast %cst_5 : f32 to vector<8x256xf32>
    %7 = arith.subf %6, %5 : vector<8x256xf32>
    %8 = math.exp %7 : vector<8x256xf32>
    %cst_6 = arith.constant 1.000000e+00 : f32
    %9 = vector.broadcast %cst_6 : f32 to vector<8x256xf32>
    %10 = arith.addf %9, %8 : vector<8x256xf32>
    %cst_7 = arith.constant 1.000000e+00 : f32
    %11 = vector.broadcast %cst_7 : f32 to vector<8x256xf32>
    %12 = arith.divf %11, %10 : vector<8x256xf32>
    %13 = arith.mulf %5, %12 : vector<8x256xf32>
    %c0_8 = arith.constant 0 : index
    %c0_9 = arith.constant 0 : index
    %14 = vector.load %arg4[%c0_8, %c0_9] : memref<256x128xf32, #tpu.memory_space<vmem>>, vector<256x128xf32>
    %cst_10 = arith.constant dense<0.000000e+00> : vector<8x128xf32>
    %15 = tpu.matmul %13, %14, %cst_10 {dimension_numbers = #tpu.dot_dimension_numbers<[1], [0], [0], [1], [0, 0, 1, 1], [], []>} : vector<8x256xf32>, vector<256x128xf32>, vector<8x128xf32> -> vector<8x128xf32>
    %c0_11 = arith.constant 0 : index
    %c0_12 = arith.constant 0 : index
    %16 = vector.load %arg5[%c0_11, %c0_12] : memref<1x128xf32, #tpu.memory_space<vmem>>, vector<1x128xf32>
    %17 = vector.broadcast %16 : vector<1x128xf32> to vector<8x128xf32>
    %18 = arith.addf %15, %17 : vector<8x128xf32>
    %c0_13 = arith.constant 0 : index
    %c0_14 = arith.constant 0 : index
    %19 = vector.load %arg6[%c0_13, %c0_14] : memref<8x128xf32, #tpu.memory_space<vmem>>, vector<8x128xf32>
    tpu.vector_store %arg6[%c0_13, %c0_14], %18 {strides = array<i32>} : memref<8x128xf32, #tpu.memory_space<vmem>>, vector<8x128xf32>,
    return
  }
  func.func @transform_0(%arg0: i32) -> (i32, i32) {
    %c0_i32 = arith.constant 0 : i32
    %c0_i32_0 = arith.constant 0 : i32
    %c0_i32_1 = arith.constant 0 : i32
    return %c0_i32, %c0_i32_0 : i32, i32
  }
  func.func @transform_1(%arg0: i32) -> (i32, i32) {
    %c0_i32 = arith.constant 0 : i32
    %c0_i32_0 = arith.constant 0 : i32
    %c0_i32_1 = arith.constant 0 : i32
    return %c0_i32, %c0_i32_0 : i32, i32
  }
  func.func @transform_2(%arg0: i32) -> (i32, i32) {
    %c0_i32 = arith.constant 0 : i32
    %c0_i32_0 = arith.constant 0 : i32
    %c0_i32_1 = arith.constant 0 : i32
    return %c0_i32, %c0_i32_0 : i32, i32
  }
  func.func @transform_3(%arg0: i32) -> (i32, i32) {
    %c0_i32 = arith.constant 0 : i32
    %c0_i32_0 = arith.constant 0 : i32
    return %c0_i32, %arg0 : i32, i32
  }
  func.func @transform_4(%arg0: i32) -> (i32, i32) {
    %c0_i32 = arith.constant 0 : i32
    %c0_i32_0 = arith.constant 0 : i32
    return %c0_i32, %arg0 : i32, i32
  }
  func.func @transform_5(%arg0: i32) -> (i32, i32) {
    %c0_i32 = arith.constant 0 : i32
    %c0_i32_0 = arith.constant 0 : i32
    return %c0_i32, %arg0 : i32, i32
  }
}

</mosaic_0001>

<bundles_post_ra>
// kernel: tpu_custom_call.1
= control target key start
LH: loop header
LB: loop body
LE: loop exit
PB: predicated region body
PF: predicated region fallthrough
CT: control target
= control target key end

     0   :  { %s1437_s0 = inlined_call_operand.hbm [shape: f32[8,32], index: 0, kind: input, shape index: {}]   ;;  %s1438_s1 = inlined_call_operand.hbm [shape: f32[32,256], index: 1, kind: input, shape index: {}]   ;;  %s1439_s2 = inlined_call_operand.hbm [shape: f32[1,256], index: 2, kind: input, shape index: {}]   ;;  %s1440_s3 = inlined_call_operand.hbm [shape: f32[256,1408], index: 3, kind: input, shape index: {}]   ;;  %s1441_s4 = inlined_call_operand.hbm [shape: f32[1,1408], index: 4, kind: input, shape index: {}]   ;;  %s1442_s5 = inlined_call_operand.hbm [shape: f32[8,1408], index: 5, kind: output, shape index: {}]  }
   0x1   :  { %1454 = sst [smem:[#allocation19_spill]] %s1438_s1 }
   0x2   :  { %1455 = sst [smem:[#allocation20_spill]] %s1440_s3 }
   0x3   :  { %10 = vsyncpa [#allocation3], 0 }
   0x4   :  { %11 = vsyncpa [#allocation6], 0 }
   0x5   :  { %12 = vsyncpa [#allocation9], 0 }
   0x6   :  { %14 = vsyncpa [#allocation9 + $0x1], 0 }
   0x7   :  { %15 = vsyncpa [#allocation4], 0 }
   0x8   :  { %17 = vsyncpa [#allocation4 + $0x1], 0  ;;  %s1119_s18 = smov 0   ;;  %s1121_s19 = smov 0  }
   0x9   :  { %s1123_s20 = smov 0   ;;  %s1125_s21 = smov 0  }
   0xa LB: > { %s1140_s22 = sadd.s32 4294967295, %s1075_s21   ;;  %s665_s23 = sadd.s32 4294967294, %s1075_s21   ;;  %s1075_s21 = sphi %s1125_s21, %s1484_s21   ;;  %s1071_s20 = sphi %s1123_s20, %s1488_s20   ;;  %s1067_s19 = sphi %s1121_s19, %s1487_s19   ;;  %s1063_s18 = sphi %s1119_s18, %s1486_s18  }
   0xb   : > { %s1144_s24 = sadd.s32 1, %s1075_s21   ;;  %s93_s25 = sadd.s32 1, %s1071_s20 }
   0xc   : > { %1456 = sst [smem:[#allocation16_spill]] %s1144_s24  ;;  %s90_s26 = ssub.s32 %s1075_s21, %s1144_s24 }
   0xd   : > { %p100_p0 = scmp.ne.s32.totalorder %s1071_s20, %s1067_s19  ;;  %p91_p1 = scmp.eq.s32.totalorder %s90_s26, 0 }
   0xe   : > { %p101_p2 = scmp.eq.s32.totalorder %s1075_s21, 0  ;;  %p106_p3 = scmp.ne.s32.totalorder %s1067_s19, %s1063_s18 }
   0xf   : > { %p1443_p4 = scmp.eq.s32.totalorder %s1140_s22, 0  ;;  %p156_p7 = scmp.eq.s32.totalorder %s1140_s22, 10 }
  0x10   : > { %s1156_s27 = scalar_select %p91_p1, %s1071_s20, %s93_s25  }
  0x11   : > { %p1158_p5 = por %p101_p2, %p100_p0  ;;  %p1164_p6 = por %p1443_p4, %p106_p3 }
  0x12   : > { %1457 = sst [smem:[#allocation17_spill]] %s1156_s27  ;;  %p162_p8 = scmp.eq.s32.totalorder %s665_s23, 10 }
  0x13   : > { %s1458_s28 = scalar_select %p1158_p5, 1, 0 }
  0x14   : > { %s1459_s29 = scalar_select %p1164_p6, 1, 0 }
  0x15   : > { %p666_p9 = scmp.ge.s32.totalorder %s1075_s21, 1  ;;  %p169_p10 = scmp.lt.s32.totalorder %s1075_s21, 12 }
  0x16   : > { %p1171_p11 = por %p156_p7, %p100_p0  ;;  %p1175_p12 = por %p162_p8, %p106_p3 }
  0x17   : > { %p1179_p13 = pnand %p666_p9, %p169_p10  ;;  %s1077_s8 = smov [#allocation5]  }
  0x18   : > { %s1460_s30 = scalar_select %p1171_p11, 1, 0 }
  0x19   : > { %s1461_s6 = scalar_select %p1175_p12, 1, 0 }
  0x1a   : > { %s1463_s7 = scalar_select %p1179_p13, 1, 0 }
  0x1b   : > { %1462 = sst [smem:[#allocation18_spill]] %s1461_s6  ;;  %p779_p1 = pneg %p1179_p13 }
  0x1c   : > { %s192_s9 = sshll.u32 %s1077_s8, 4  ;;  %s217_s11 = sand.u32 1, %s1075_s21   ;;  %s193_s9 = int_to_ptr.vmem [resolvable:$true] %s192_s9 }
  0x1d   : > { %p1187_p2 = pnand %p779_p1, %p1443_p4  ;;  %s1465_s1 = sld [smem:[#allocation19_spill]] }
  0x1f   : > { %s1464_s10 = scalar_select %p1187_p2, 1, 0 }
  0x20   : > { %p1201_p7 = pneg %p1187_p2 }
  0x23   : > { %s857_s14 = scalar_lea.hbm %s1465_s1, 1024 }
  0x24   : > { %p858_p3 = scmp.ne.s32.totalorder %s1465_s1, %s857_s14  ;;  %p864_p10 = scmp.lt.u32.totalorder %s857_s14, %s1465_s1 }
  0x26   : > { %p860_p8 = pnand %p1201_p7, %p858_p3 }
  0x28   : > { %p861_p9 = pneg %p860_p8 }
  0x2a   : > { %p866_p1 = pnand %p864_p10, %p861_p9 }
  0x2c   : > { %869 = shalt.err (!%p866_p1)
}
  0x2d   : > { %s870_s26 = scalar_lea.vmem %s193_s9, 1024  ;;  %p878_p11 = scmp.lt.s32.totalorder %s193_s9, %s193_s9 }
  0x2e   : > { %p871_p4 = scmp.ne.s32.totalorder %s193_s9, %s870_s26  ;;  %p879_p6 = scmp.lt.s32.totalorder %s870_s26, %s870_s26 }
  0x30   : > { %p873_p0 = pnand %p871_p4, %p1201_p7  ;;  %p880_p13 = por %p879_p6, %p878_p11 }
  0x32   : > { %p874_p12 = pneg %p873_p0 }
  0x34   : > { %p881_p5 = pnand %p880_p13, %p874_p12 }
  0x36   : > { %884 = shalt.err (!%p881_p5)
}
  0x37   : > { %s1078_s8 = smov 256   ;;  %s1079_s12 = smov 16  }
  0x38   : > { %785 = dma.hbm_to_vmem [thread:$0]  (!%p1187_p2), %s1465_s1, 1024, %s193_s9, [#allocation6], %s1078_s8, %s1078_s8, %s1079_s12  }
  0x39   : > { %p1467_p4 = scmp.ne.s32.totalorder %s1458_s28, 0  ;;  %p1468_p0 = scmp.lt.s32.totalorder %s1075_s21, 11 }
  0x3a   : > { %s1451_s16 = sand.u32 1, %s1071_s20   ;;  %s672_s25 = sshll.u32 %s1075_s21, 7 }
  0x3b   : > { %p1221_p3 = pnand %p1468_p0, %p1467_p4  ;;  %s671_s23 = sshll.u32 %s1451_s16, 8 }
  0x3c   : > { %s1470_s3 = sld [smem:[#allocation20_spill]]  ;;  %s221_s28 = scalar_lea.vmem [#allocation8], %s671_s23 }
  0x3d   : > { %s227_s9 = sshll.u32 %s221_s28, 4  ;;  %s1236_s8 = scalar_lea.sflag [#allocation9], %s217_s11  ;;  %s1234_s9 = int_to_ptr.vmem [resolvable:$true] %s227_s9 }
  0x3e   : > { %p1453_p6 = pneg %p1221_p3 }
  0x42   : > { %s1232_s24 = scalar_lea.hbm %s1470_s3, %s672_s25  ;;  %s890_s14 = scalar_lea.hbm %s1470_s3, 45056 }
  0x43   : > { %s885_s12 = scalar_lea.hbm %s1232_s24, 4096  ;;  %p891_p13 = scmp.lt.u32.totalorder %s1232_s24, %s1470_s3 }
  0x44   : > { %p886_p5 = scmp.ne.s32.totalorder %s1232_s24, %s885_s12  ;;  %p892_p8 = scmp.lt.u32.totalorder %s890_s14, %s885_s12 }
  0x45   : > { %p894_p10 = scmp.lt.u32.totalorder %s885_s12, %s1232_s24 }
  0x46   : > { %p888_p11 = pnand %p1453_p6, %p886_p5  ;;  %p893_p9 = por %p892_p8, %p891_p13 }
  0x48   : > { %p889_p12 = pneg %p888_p11  ;;  %p895_p1 = por %p894_p10, %p893_p9 }
  0x4a   : > { %p896_p4 = pnand %p895_p1, %p889_p12 }
  0x4c   : > { %899 = shalt.err (!%p896_p4)
}
  0x4d   : > { %s900_s11 = scalar_lea.vmem %s1234_s9, 4096  ;;  %s1080_s23 = smov [#allocation8]  }
  0x4e   : > { %p901_p0 = scmp.ne.s32.totalorder %s1234_s9, %s900_s11  ;;  %s905_s28 = sshll.u32 %s1080_s23, 4  ;;  %s906_s28 = int_to_ptr.vmem [resolvable:$false] %s905_s28 }
  0x4f   : > { %s907_s27 = scalar_lea.vmem %s906_s28, 8192  ;;  %p908_p2 = scmp.lt.s32.totalorder %s1234_s9, %s906_s28 }
  0x50   : > { %p903_p5 = pnand %p901_p0, %p1453_p6  ;;  %p909_p13 = scmp.lt.s32.totalorder %s907_s27, %s900_s11 }
  0x52   : > { %p904_p11 = pneg %p903_p5  ;;  %p910_p8 = por %p909_p13, %p908_p2 }
  0x54   : > { %p911_p9 = pnand %p910_p8, %p904_p11 }
  0x56   : > { %914 = shalt.err (!%p911_p9)
}
  0x57   : > { %s1081_s12 = smov 1408   ;;  %s1082_s13 = smov 128  }
  0x58   : > { %s1083_s14 = smov 8   ;;  %s1084_s25 = smov [#allocation2]  }
  0x59   : > { %792 = dma.hbm_to_vmem [thread:$0]  (!%p1221_p3), %s1232_s24, 4096, %s1234_s9, %s1236_s8, %s1081_s12, %s1082_s13, %s1083_s14  }
  0x5a   : > { %s182_s26 = sshll.u32 %s1084_s25, 4  ;;  %s1085_s23 = smov [#allocation7]   ;;  %s183_s26 = int_to_ptr.vmem [resolvable:$true] %s182_s26 }
  0x5b   : > { %s206_s16 = sshll.u32 %s1085_s23, 4  ;;  %s915_s27 = scalar_lea.hbm %s1437_s0, 128  ;;  %s1264_s16 = int_to_ptr.vmem [resolvable:$true] %s206_s16 }
  0x5c   : > { %p916_p2 = scmp.ne.s32.totalorder %s1437_s0, %s915_s27  ;;  %p922_p1 = scmp.lt.u32.totalorder %s915_s27, %s1437_s0 }
  0x5e   : > { %p918_p12 = pnand %p916_p2, %p1201_p7 }
  0x60   : > { %p919_p10 = pneg %p918_p12 }
  0x62   : > { %p924_p4 = pnand %p922_p1, %p919_p10 }
  0x64   : > { %927 = shalt.err (!%p924_p4)
}
  0x65   : > { %s928_s9 = scalar_lea.vmem %s183_s26, 128  ;;  %p936_p13 = scmp.lt.s32.totalorder %s183_s26, %s183_s26 }
  0x66   : > { %p929_p0 = scmp.ne.s32.totalorder %s183_s26, %s928_s9  ;;  %p937_p8 = scmp.lt.s32.totalorder %s928_s9, %s928_s9 }
  0x68   : > { %p931_p5 = pnand %p929_p0, %p1201_p7  ;;  %p938_p9 = por %p937_p8, %p936_p13 }
  0x6a   : > { %p932_p11 = pneg %p931_p5 }
  0x6c   : > { %p939_p6 = pnand %p938_p9, %p932_p11 }
  0x6e   : > { %942 = shalt.err (!%p939_p6)
}
  0x6f   : > { %p1471_p2 = scmp.ne.s32.totalorder %s1464_s10, 0  ;;  %s943_s13 = scalar_lea.hbm %s1439_s2, 32 }
  0x70   : > { %p944_p12 = scmp.ne.s32.totalorder %s1439_s2, %s943_s13  ;;  %p950_p6 = scmp.lt.u32.totalorder %s943_s13, %s1439_s2 }
  0x71   : > { %782 = dma.hbm_to_vmem [thread:$0]  (!%p1471_p2), %s1437_s0, 128, %s183_s26, [#allocation3]  }
  0x72   : > { %p946_p10 = pnand %p944_p12, %p1201_p7 }
  0x74   : > { %p947_p1 = pneg %p946_p10 }
  0x76   : > { %p952_p4 = pnand %p950_p6, %p947_p1 }
  0x78   : > { %955 = shalt.err (!%p952_p4)
}
  0x79   : > { %s956_s26 = scalar_lea.vmem %s1264_s16, 32  ;;  %p964_p13 = scmp.lt.s32.totalorder %s1264_s16, %s1264_s16 }
  0x7a   : > { %p957_p0 = scmp.ne.s32.totalorder %s1264_s16, %s956_s26  ;;  %p965_p8 = scmp.lt.s32.totalorder %s956_s26, %s956_s26 }
  0x7c   : > { %p959_p5 = pnand %p957_p0, %p1201_p7  ;;  %p966_p9 = por %p965_p8, %p964_p13 }
  0x7e   : > { %p960_p11 = pneg %p959_p5 }
  0x80   : > { %p967_p12 = pnand %p966_p9, %p960_p11 }
  0x82   : > { %970 = shalt.err (!%p967_p12)
}
  0x83   : > { %788 = dma.hbm_to_vmem [thread:$0]  (!%p1471_p2), %s1439_s2, 32, %s1264_s16, [#allocation6]  }
  0x84   : > { %s673_s24 = sshll.u32 %s1075_s21, 4  ;;  %s1472_s3 = sand.u32 1, %s1071_s20  }
  0x85   : > { %s1311_s1 = scalar_lea.hbm %s1441_s4, %s673_s24  ;;  %s240_s10 = scalar_lea.vmem [#allocation10], %s1472_s3 }
  0x86   : > { %s247_s6 = sshll.u32 %s240_s10, 4  ;;  %s971_s12 = scalar_lea.hbm %s1311_s1, 16  ;;  %s248_s6 = int_to_ptr.vmem [resolvable:$true] %s247_s6 }
  0x87   : > { %p972_p7 = scmp.ne.s32.totalorder %s1311_s1, %s971_s12  ;;  %p1473_p10 = pneg %p1221_p3 }
  0x88   : > { %s976_s14 = scalar_lea.hbm %s1441_s4, 176  ;;  %p977_p6 = scmp.lt.u32.totalorder %s1311_s1, %s1441_s4 }
  0x89   : > { %p974_p1 = pnand %p972_p7, %p1473_p10  ;;  %p978_p4 = scmp.lt.u32.totalorder %s976_s14, %s971_s12 }
  0x8a   : > { %p980_p5 = scmp.lt.u32.totalorder %s971_s12, %s1311_s1 }
  0x8b   : > { %p975_p2 = pneg %p974_p1  ;;  %p979_p0 = por %p978_p4, %p977_p6 }
  0x8d   : > { %p981_p11 = por %p980_p5, %p979_p0 }
  0x8f   : > { %p982_p13 = pnand %p981_p11, %p975_p2 }
  0x91   : > { %985 = shalt.err (!%p982_p13)
}
  0x92   : > { %s986_s11 = scalar_lea.vmem %s248_s6, 16  ;;  %p1474_p9 = pmov %p1473_p10 }
  0x93   : > { %p987_p8 = scmp.ne.s32.totalorder %s248_s6, %s986_s11  ;;  %s1086_s26 = smov [#allocation10]  }
  0x94   : > { %s991_s28 = sshll.u32 %s1086_s26, 4  ;;  %s992_s28 = int_to_ptr.vmem [resolvable:$false] %s991_s28 }
  0x95   : > { %p989_p12 = pnand %p987_p8, %p1474_p9  ;;  %s993_s27 = scalar_lea.vmem %s992_s28, 32 }
  0x96   : > { %p994_p10 = scmp.lt.s32.totalorder %s248_s6, %s992_s28  ;;  %p995_p1 = scmp.lt.s32.totalorder %s993_s27, %s986_s11 }
  0x97   : > { %p990_p7 = pneg %p989_p12 }
  0x98   : > { %p996_p4 = por %p995_p1, %p994_p10 }
  0x9a   : > { %p997_p6 = pnand %p996_p4, %p990_p7 }
  0x9c   : > { %1000 = shalt.err (!%p997_p6)
}
  0x9d   : > { %795 = dma.hbm_to_vmem [thread:$0]  (!%p1221_p3), %s1311_s1, 16, %s248_s6, %s1236_s8  }
  0x9e   : > { %p1475_p2 = scmp.ne.s32.totalorder %s1463_s7, 0 }
  0x9f   : > { %p1476_p0 = scmp.eq.s32.totalorder (!%p1475_p2), %s1140_s22, 0 }
  0xa0   : > { %256 = sbr.rel (%p1475_p2) target bundleno = 664 (0x298), region = 40 }
  0xa7   : > { %1046 = dma.done.wait (%p1476_p0), [#allocation3], 128   ;;  %p1477_p5 = pmov %p1476_p0 }
  0xa8   : > { %p1478_p11 = pmov %p1476_p0 }
  0xa9   : > { %1048 = vsyncadd (%p1477_p5), [#allocation3], 4294967168 }
  0xaa   : > { %1050 = dma.done.wait (%p1478_p11), [#allocation6], 1056   ;;  %p1479_p13 = pmov %p1476_p0 }
  0xab   : > { %s270_s15 = sand.u32 1, %s1140_s22   ;;  %s1347_s8 = sand.u32 1, %s1067_s19  }
  0xac   : > { %1052 = vsyncadd (%p1479_p13), [#allocation6], 4294966240  ;;  %s678_s7 = sshll.u32 %s1347_s8, 8  ;;  %s271_s24 = scalar_lea.sflag [#allocation9], %s270_s15 }
  0xad   : > { %s1350_s17 = scalar_lea.vmem [#allocation8], %s678_s7  ;;  %p1480_p3 = scmp.ne.s32.totalorder %s1459_s29, 0 }
  0xaf   : > { %1054 = dma.done.wait (%p1480_p3), %s271_s24, 4112  }
  0xb0   : > { %1056 = vsyncadd (%p1480_p3), %s271_s24, 4294963184  ;;  %v1087_v0 = vmov 0.0   ;;  %v315_v1 = vld [vmem:[#allocation5 + $0x8] sm:$0xff]  ;;  %v317_v2 = vld [vmem:[#allocation5 + $0x18] sm:$0xff]  ;;  %vm334_vm0 = vcmask 261120   ;;  %v324_v62 = vlaneseq  ;;  %s679_s29 = sshll.u32 %s1347_s8, 3 }
  0xb1   : > { %402 = vmatprep.mubr.f32.mxu0 %v1087_v0  ;;  %v314_v3 = vld [vmem:[#allocation5] sm:$0xff]  ;;  %v721_v4 = vpack.c.bf16 %v317_v2, %v315_v1  ;;  %v316_v5 = vld [vmem:[#allocation5 + $0x10] sm:$0xff]  ;;  %v319_v6 = vld [vmem:[#allocation5 + $0x28] sm:$0xff]  ;;  %s282_s9 = scalar_lea.vmem [#allocation10], %s1347_s8  ;;  %s683_s1 = sshll.u32 %s1140_s22, 7 }
  0xb2   : > { %v321_v7 = vld [vmem:[#allocation5 + $0x38] sm:$0xff]  ;;  %v723_v8 = vpack.c.bf16 %v316_v5, %v314_v3  ;;  %v318_v10 = vld [vmem:[#allocation5 + $0x20] sm:$0xff]  ;;  %v320_v11 = vld [vmem:[#allocation5 + $0x30] sm:$0xff]  ;;  %v325_v63 = vshrl.u32 %v324_v62, 7  ;;  %s312_s3 = scalar_lea.vmem [#allocation11], %s679_s29  ;;  %s1394_s16 = scalar_lea.hbm %s1442_s5, %s683_s1 }
  0xb3   : > { %v725_v9 = vpack.c.bf16 %v321_v7, %v319_v6  ;;  %722 = vmatprep.subr.bf16.mxu0 %v721_v4  ;;  %v727_v12 = vpack.c.bf16 %v320_v11, %v318_v10  ;;  %v313_v13 = vld [vmem:[#allocation2] sm:$0xff]  ;;  %v439_v14 = vld [vmem:[%s1350_s17 + $0x80] sm:$0xff]  ;;  %v440_v15 = vld [vmem:[%s1350_s17 + $0x88] sm:$0xff]  ;;  %s547_s10 = sshll.u32 %s312_s3, 4  ;;  %s534_s13 = scalar_lea.sflag [#allocation4], %s1347_s8  ;;  %s1396_s10 = int_to_ptr.vmem [resolvable:$true] %s547_s10 }
  0xb4   : > { %724 = vmatpush1.bf16.msra.mxu0 %v723_v8  ;;  %v729_v16 = vpack.c.bf16 %v440_v15, %v439_v14  ;;  %v423_v17 = vld [vmem:[%s1350_s17] sm:$0xff]  ;;  %v424_v18 = vld [vmem:[%s1350_s17 + $0x8] sm:$0xff]  ;;  %v441_v20 = vld [vmem:[%s1350_s17 + $0x90] sm:$0xff]  ;;  %v326_v0 = vsub.s32 0, %v325_v63  ;;  %v330_v2 = vsub.s32 1, %v325_v63  ;;  %s1001_s14 = scalar_lea.vmem %s1396_s10, 128 }
  0xb5   : > { %726 = vmatprep.subr.bf16.mxu0 %v725_v9  ;;  %v731_v19 = vpack.c.bf16 %v424_v18, %v423_v17  ;;  %v442_v21 = vld [vmem:[%s1350_s17 + $0x98] sm:$0xff]  ;;  %v425_v23 = vld [vmem:[%s1350_s17 + $0x10] sm:$0xff]  ;;  %v443_v26 = vld [vmem:[%s1350_s17 + $0xa0] sm:$0xff]  ;;  %p1002_p8 = scmp.ne.s32.totalorder %s1396_s10, %s1001_s14  ;;  %p1481_p9 = scmp.ne.s32.totalorder %s1460_s30, 0 }
  0xb6   : > { %730 = vmatprep.subr.bf16.mxu1 %v729_v16  ;;  %v733_v22 = vpack.c.bf16 %v442_v21, %v441_v20  ;;  %v426_v24 = vld [vmem:[%s1350_s17 + $0x18] sm:$0xff]  ;;  %v444_v27 = vld [vmem:[%s1350_s17 + $0xa8] sm:$0xff]  ;;  %v427_v29 = vld [vmem:[%s1350_s17 + $0x20] sm:$0xff]  ;;  %s1088_s22 = smov [#allocation11]  }
  0xb7   : > { %732 = vmatpush3.bf16.msra.mxu1 %v731_v19  ;;  %v735_v25 = vpack.c.bf16 %v426_v24, %v425_v23  ;;  %v737_v28 = vpack.c.bf16 %v444_v27, %v443_v26  ;;  %v428_v30 = vld [vmem:[%s1350_s17 + $0x28] sm:$0xff]  ;;  %v445_v32 = vld [vmem:[%s1350_s17 + $0xb0] sm:$0xff]  ;;  %v446_v33 = vld [vmem:[%s1350_s17 + $0xb8] sm:$0xff]  ;;  %p1003_p12 = pnand %p1002_p8, %p1481_p9  ;;  %s1005_s25 = sshll.u32 %s1088_s22, 4  ;;  %s1006_s25 = int_to_ptr.vmem [resolvable:$false] %s1005_s25 }
  0xb8   : > { %728 = vmatpush1.bf16.msra.mxu0 %v727_v12  ;;  %734 = vmatprep.subr.bf16.mxu1 %v733_v22  ;;  %v739_v31 = vpack.c.bf16 %v428_v30, %v427_v29  ;;  %v741_v34 = vpack.c.bf16 %v446_v33, %v445_v32  ;;  %v429_v35 = vld [vmem:[%s1350_s17 + $0x30] sm:$0xff]  ;;  %v430_v36 = vld [vmem:[%s1350_s17 + $0x38] sm:$0xff]  ;;  %v447_v38 = vld [vmem:[%s1350_s17 + $0xc0] sm:$0xff]  ;;  %s1007_s23 = scalar_lea.vmem %s1006_s25, 256  ;;  %p1008_p10 = scmp.lt.s32.totalorder %s1396_s10, %s1006_s25 }
  0xb9   : > { %v743_v37 = vpack.c.bf16 %v430_v36, %v429_v35  ;;  %v448_v39 = vld [vmem:[%s1350_s17 + $0xc8] sm:$0xff]  ;;  %v431_v41 = vld [vmem:[%s1350_s17 + $0x40] sm:$0xff]  ;;  %v449_v44 = vld [vmem:[%s1350_s17 + $0xd0] sm:$0xff]  ;;  %p1004_p7 = pneg %p1003_p12  ;;  %p1009_p1 = scmp.lt.s32.totalorder %s1007_s23, %s1001_s14 }
  0xba   : > { %v745_v40 = vpack.c.bf16 %v448_v39, %v447_v38  ;;  %v432_v42 = vld [vmem:[%s1350_s17 + $0x48] sm:$0xff]  ;;  %v450_v45 = vld [vmem:[%s1350_s17 + $0xd8] sm:$0xff]  ;;  %v433_v47 = vld [vmem:[%s1350_s17 + $0x50] sm:$0xff] }
  0xbb   : > { %680 = vmatmul.mubr.msk.f32.vlgmr.msra.gmra.mrb[0].mxu0 %vm334_vm0, %v313_v13  ;;  %736 = vmatpush3.bf16.msra.mxu1 %v735_v25  ;;  %v747_v43 = vpack.c.bf16 %v432_v42, %v431_v41  ;;  %v749_v46 = vpack.c.bf16 %v450_v45, %v449_v44  ;;  %v434_v48 = vld [vmem:[%s1350_s17 + $0x58] sm:$0xff]  ;;  %v451_v50 = vld [vmem:[%s1350_s17 + $0xe0] sm:$0xff]  ;;  %v452_v51 = vld [vmem:[%s1350_s17 + $0xe8] sm:$0xff]  ;;  %p1010_p4 = por %p1009_p1, %p1008_p10 }
  0xbc   : > { %738 = vmatprep.subr.bf16.mxu1 %v737_v28  ;;  %v751_v49 = vpack.c.bf16 %v434_v48, %v433_v47  ;;  %v753_v52 = vpack.c.bf16 %v452_v51, %v451_v50  ;;  %v435_v53 = vld [vmem:[%s1350_s17 + $0x60] sm:$0xff]  ;;  %v436_v54 = vld [vmem:[%s1350_s17 + $0x68] sm:$0xff]  ;;  %v453_v56 = vld [vmem:[%s1350_s17 + $0xf0] sm:$0xff] }
  0xbd   : > { %v755_v55 = vpack.c.bf16 %v436_v54, %v435_v53  ;;  %v454_v57 = vld [vmem:[%s1350_s17 + $0xf8] sm:$0xff]  ;;  %v437_v59 = vld [vmem:[%s1350_s17 + $0x70] sm:$0xff]  ;;  %p1011_p6 = pnand %p1010_p4, %p1004_p7 }
  0xbe   : > { %v757_v58 = vpack.c.bf16 %v454_v57, %v453_v56  ;;  %v438_v60 = vld [vmem:[%s1350_s17 + $0x78] sm:$0xff]  ;;  %v681_v22 = vld [vmem:[%s282_s9] ss:$0 sm:$0xff] }
  0xbf   : > { %740 = vmatpush3.bf16.msra.mxu1 %v739_v31  ;;  %v759_v61 = vpack.c.bf16 %v438_v60, %v437_v59  ;;  %v322_v1 = vld [vmem:[#allocation7] sm:$0x3] }
  0xc0   : > { %742 = vmatprep.subr.bf16.mxu1 %v741_v34  ;;  %v327_v3 = vrot.slane %v322_v1, %v326_v0  ;;  %v331_v4 = vrot.slane %v322_v1, %v330_v2 }
  0xc3   : > { %744 = vmatpush3.bf16.msra.mxu1 %v743_v37 }
  0xc4   : > { %746 = vmatprep.subr.bf16.mxu1 %v745_v40 }
  0xc7   : > { %748 = vmatpush3.bf16.msra.mxu1 %v747_v43 }
  0xc8   : > { %750 = vmatprep.subr.bf16.mxu1 %v749_v46 }
  0xcb   : > { %752 = vmatpush3.bf16.msra.mxu1 %v751_v49 }
  0xcc   : > { %754 = vmatprep.subr.bf16.mxu1 %v753_v52 }
  0xcf   : > { %756 = vmatpush3.bf16.msra.mxu1 %v755_v55 }
  0xd0   : > { %758 = vmatprep.subr.bf16.mxu1 %v757_v58 }
  0xd3   : > { %760 = vmatpush3.bf16.msra.mxu1 %v759_v61 }
 0x18e   : > { %v404_v5 = vpop.f32.mrb[0].mxu0 }
 0x18f   : > { %v405_v6 = vadd.f32 %v404_v5, %v327_v3  ;;  %v406_v7 = vpop.f32.mrb[1].mxu0 }
 0x190   : > { %v407_v8 = vadd.f32 %v406_v7, %v331_v4 }
 0x191   : > { %v409_v9 = vsub.f32 0.0, %v405_v6 }
 0x192   : > { %v410_v10 = vsub.f32 0.0, %v407_v8 }
 0x193   : > { %v411_v11 = vmul.f32 1.442695, %v409_v9 }
 0x194   : > { %v413_v12 = vmul.f32 1.442695, %v410_v10 }
 0x195   : > { %849 = vpow2.f32 %v411_v11 }
 0x196   : > { %851 = vpow2.f32 %v413_v12 }
 0x19f   : > { %v850_v13 = vpop.eup %849 }
 0x1a0   : > { %v852_v14 = vpop.eup %851  ;;  %v415_v15 = vadd.f32 1.0, %v850_v13 }
 0x1a1   : > { %v416_v16 = vadd.f32 1.0, %v852_v14 }
 0x1a2   : > { %853 = vrcp.f32 %v415_v15 }
 0x1a3   : > { %855 = vrcp.f32 %v416_v16 }
 0x1ac   : > { %v854_v17 = vpop.eup %853 }
 0x1ad   : > { %v856_v18 = vpop.eup %855  ;;  %v421_v20 = vmul.f32 %v854_v17, %v405_v6 }
 0x1ae   : > { %v422_v19 = vmul.f32 %v856_v18, %v407_v8 }
 0x1b0   : > { %526 = vmatprep.mubr.f32.mxu1 %v422_v19 }
 0x1b1   : > { %527 = vmatmul.mubr.f32.vlgmr.msra.gmra.mrb[0].mxu1 %v421_v20 }
 0x284   : > { %v718_v21 = vpop.f32.mrb[0].mxu1 }
 0x285   : > { %v719_v23 = vpop.f32.mrb[1].mxu1 }
 0x286   : > { %v720_v24 = vadd.f32 %v719_v23, %v718_v21 }
 0x288   : > { %v529_v25 = vadd.f32 %v720_v24, %v681_v22 }
 0x28a   : > { %532 = vst [vmem:[%s312_s3] sm:$0xff] %v529_v25 }
 0x28b   : > { %1014 = shalt.err (!%p1011_p6)
}
 0x28c   : > { %s1015_s11 = scalar_lea.hbm %s1394_s16, 128  ;;  %s1019_s27 = scalar_lea.hbm %s1442_s5, 1408 }
 0x28d   : > { %p1016_p2 = scmp.ne.s32.totalorder %s1394_s16, %s1015_s11  ;;  %p1020_p11 = scmp.lt.u32.totalorder %s1394_s16, %s1442_s5 }
 0x28e   : > { %p1021_p13 = scmp.lt.u32.totalorder %s1019_s27, %s1015_s11  ;;  %p1023_p8 = scmp.lt.u32.totalorder %s1015_s11, %s1394_s16 }
 0x28f   : > { %p1017_p0 = pnand %p1016_p2, %p1481_p9 }
 0x290   : > { %p1022_p3 = por %p1021_p13, %p1020_p11 }
 0x291   : > { %p1018_p5 = pneg %p1017_p0 }
 0x292   : > { %p1024_p12 = por %p1023_p8, %p1022_p3 }
 0x294   : > { %p1025_p7 = pnand %p1024_p12, %p1018_p5 }
 0x296   : > { %1028 = shalt.err (!%p1025_p7)
}
 0x297   : > { %777 = dma.vmem_to_hbm [thread:$0]  (%p1481_p9), %s1396_s10, 128, %s1394_s16, %s534_s13  }
 0x298 PF: > { %s1482_s7 = sld [smem:[#allocation18_spill]]  ;;  %p807_p10 = scmp.ge.s32.totalorder %s1075_s21, 2 }
 0x299   : > { %s559_s24 = sand.u32 1, %s1063_s18  }
 0x29a   : > { %s560_s17 = scalar_lea.sflag [#allocation4], %s559_s24 }
 0x29e   : > { %p1483_p1 = scmp.ne.s32.totalorder %s1482_s7, 0 }
 0x2a0   : > { %p797_p4 = pnand %p807_p10, %p1483_p1 }
 0x2a2   : > { %1058 = dma.done.wait (!%p797_p4), %s560_s17, 128  }
 0x2a3   : > { %1060 = vsyncadd (!%p797_p4), %s560_s17, 4294967168  ;;  %s1484_s21 = sld [smem:[#allocation16_spill]]  ;;  %s1485_s29 = sld [smem:[#allocation17_spill]] }
 0x2a4   : > { %s1486_s18 = smov %s1067_s19  ;;  %s1487_s19 = smov %s1071_s20 }
 0x2a9   : > { %p20_p6 = scmp.ge.s32.totalorder %s1484_s21, 13   ;;  %s1488_s20 = smov %s1485_s29 }
 0x2ab   :  { %22 = sbr.rel (!%p20_p6) target bundleno = 10 (0xa), region = 109 }
 0x2b2   :  { %565 = vsyncpa [#allocation3], 1 }
 0x2b3   :  { %567 = vsyncpa [#allocation3 + $0x1], 1 }
 0x2b4   :  { %568 = vsyncpa [#allocation6], 1 }
 0x2b5   :  { %569 = vsyncpa [#allocation9], 1 }
 0x2b6   :  { %571 = vsyncpa [#allocation9 + $0x1], 1 }
 0x2b7   :  { %572 = vsyncpa [#allocation4], 1 }
 0x2b8   :  { %574 = vsyncpa [#allocation4 + $0x1], 1 }

</bundles_post_ra>
